<compile_context>
chip_gen: v7x
topology: tpu7x:2x2x1
jax: 0.10.0
libtpu: 0.0.40
codegen_flags: <defaults>
</compile_context>

<pallas_src>
import jax
import jax.numpy as jnp
from jax.experimental import pallas as pl
from jax.experimental.pallas import tpu as pltpu


def _round_up(a, b):
    return ((a + b - 1) // b) * b


def _cdiv(a, b):
    return (a + b - 1) // b


def _vmem_capacity_bytes():
    """Physical VMEM per core; conservative (v7x) fallback if the query fails."""
    try:
        return int(pltpu.get_tpu_info().vmem_capacity_bytes)
    except Exception:
        return 64 << 20


def _silu_gate(h1, h3):
    # SiLU(h1) * h3 in f32.  exp on the EUP; approx reciprocal also on the EUP
    # (otherwise-idle slot) instead of a VALU Newton-iteration divide.
    e = jnp.exp(-h1)
    return (h1 * pl.reciprocal(1.0 + e, approx=True)) * h3


def _ffn_kernel_multi(x_ref, w13_ref, w2_ref, o_ref, acc_ref):
    # x_ref:   (tm, D)       token tile (same block across all h steps)
    # w13_ref: (2, D, th)    stacked slices of W1^T / W3^T over the hidden dim
    # w2_ref:  (th, D)       slice of W2^T
    # o_ref:   (tm, D)       output tile (resident across the h axis)
    # acc_ref: (tm, D)       f32 accumulator scratch
    h = pl.program_id(1)

    @pl.when(h == 0)
    def _():
        acc_ref[...] = jnp.zeros_like(acc_ref)

    x = x_ref[...]
    h1 = jnp.dot(x, w13_ref[0], preferred_element_type=jnp.float32)
    h3 = jnp.dot(x, w13_ref[1], preferred_element_type=jnp.float32)
    gated = _silu_gate(h1, h3)
    acc_ref[...] += jnp.dot(gated.astype(w2_ref.dtype), w2_ref[...],
                            preferred_element_type=jnp.float32)

    @pl.when(h == pl.num_programs(1) - 1)
    def _():
        o_ref[...] = acc_ref[...].astype(o_ref.dtype)


def _ffn_kernel_single(x_ref, w13_ref, w2_ref, o_ref):
    # Single hidden tile: no accumulator scratch, write the result directly.
    x = x_ref[...]
    h1 = jnp.dot(x, w13_ref[0], preferred_element_type=jnp.float32)
    h3 = jnp.dot(x, w13_ref[1], preferred_element_type=jnp.float32)
    gated = _silu_gate(h1, h3)
    o_ref[...] = jnp.dot(gated.astype(w2_ref.dtype), w2_ref[...],
                         preferred_element_type=jnp.float32).astype(o_ref.dtype)


def prepare_ffn_weights(w1, w2, w3, dtype=jnp.bfloat16):
    """One-time conversion from PyTorch [out, in] layout.

    Returns:
      w13t: (2, D, H)  stacked W1^T / W3^T (fused up-projection operand)
      w2t:  (H, D)     W2^T
    Default dtype is bf16 (native MXU rate, half the HBM weight traffic);
    accumulation inside the kernel stays f32.
    """
    w13t = jnp.stack([w1.T, w3.T], axis=0).astype(dtype)   # (2, D, H)
    w2t = w2.T.astype(dtype)                                # (H, D)
    return w13t, w2t


def ffn_simple_pallas(x, w13t, w2t, *, tm=512, th=None):
    """SwiGLU FFN forward.

    x:    [..., D]
    w13t: (2, D, H)  stacked W1^T / W3^T   (see prepare_ffn_weights)
    w2t:  (H, D)     W2^T
    """
    orig_shape = x.shape
    out_dtype = x.dtype
    D = orig_shape[-1]
    H = w13t.shape[2]

    compute_dtype = w13t.dtype
    x2d = x.reshape(-1, D).astype(compute_dtype)
    M = x2d.shape[0]

    xb = jnp.dtype(compute_dtype).itemsize
    wb = jnp.dtype(w13t.dtype).itemsize
    ob = jnp.dtype(out_dtype).itemsize

    # ---- Row (M) tile. ----
    tm_eff = min(tm, _round_up(M, 8))
    if M > 128 and _cdiv(M, tm_eff) < 2:
        # Ensure >= 2 row tiles so both TensorCores (v7x megacore) get work
        # on the "parallel" M axis.
        tm_eff = _round_up(_cdiv(M, 2), 8)
    Mp = _round_up(M, tm_eff)

    # ---- Hidden (H) tile sized from the real, generation-aware VMEM budget. ----
    cap = _vmem_capacity_bytes()
    usable = cap * 3 // 4                      # 25% headroom for compiler scratch
    fixed = (2 * tm_eff * D * xb               # x tile, double buffered
             + 2 * tm_eff * D * ob             # out tile, double buffered
             + tm_eff * D * 4                  # f32 accumulator scratch
             + (2 << 20))                      # slack (semaphores, internal scratch)
    per_th = (6 * D * wb                       # (2,D,th) w13 + (th,D) w2, double buffered
              + 16 * tm_eff)                   # h1/h3/e/gated f32 temporaries
    th_budget = max((usable - fixed) // per_th, 128)
    if th is not None:
        th_budget = min(th_budget, th)
    if H <= th_budget:
        th_eff = H                              # single full-H tile
    else:
        th_eff = max((th_budget // 128) * 128, 128)   # lane-aligned hidden tile
    Hp = _round_up(H, th_eff)

    # Zero-pad tokens / hidden dim to the tile grid (exact for SwiGLU).
    if Mp != M:
        x2d = jnp.pad(x2d, ((0, Mp - M), (0, 0)))
    if Hp != H:
        w13t = jnp.pad(w13t, ((0, 0), (0, 0), (0, Hp - H)))
        w2t = jnp.pad(w2t, ((0, Hp - H), (0, 0)))

    grid = (Mp // tm_eff, Hp // th_eff)
    multi_h = grid[1] > 1

    # ---- Explicit VMEM limit from the actual tile footprint, capped per-gen. ----
    est = (2 * tm_eff * D * xb
           + 4 * D * th_eff * wb               # (2, D, th) slice, double buffered
           + 2 * th_eff * D * wb               # (th, D) slice, double buffered
           + 2 * tm_eff * D * ob
           + (tm_eff * D * 4 if multi_h else 0)
           + 4 * tm_eff * th_eff * 4)          # f32 intermediates
    vmem_limit = int(min(max(est * 5 // 4 + (2 << 20), 16 << 20), cap * 7 // 8))

    # Grid-aware traffic: full weights are re-streamed once per M tile.
    n_m = grid[0]
    cost = pl.CostEstimate(
        flops=6 * M * D * H,                    # three M*D*H matmuls
        transcendentals=M * H,                  # exp in SiLU
        bytes_accessed=int(Mp * D * xb + n_m * 3 * D * Hp * wb + Mp * D * ob),
    )

    if multi_h:
        kernel = _ffn_kernel_multi
        scratch_shapes = [pltpu.VMEM((tm_eff, D), jnp.float32)]
    else:
        kernel = _ffn_kernel_single
        scratch_shapes = []

    out = pl.pallas_call(
        kernel,
        out_shape=jax.ShapeDtypeStruct((Mp, D), out_dtype),
        grid_spec=pltpu.PrefetchScalarGridSpec(
            num_scalar_prefetch=0,
            grid=grid,
            in_specs=[
                pl.BlockSpec((tm_eff, D), lambda i, h: (i, 0)),        # x rows
                pl.BlockSpec((2, D, th_eff), lambda i, h: (0, 0, h)),  # W1^T/W3^T slices
                pl.BlockSpec((th_eff, D), lambda i, h: (h, 0)),        # W2^T slice
            ],
            out_specs=pl.BlockSpec((tm_eff, D), lambda i, h: (i, 0)),
            scratch_shapes=scratch_shapes,
        ),
        compiler_params=pltpu.CompilerParams(
            dimension_semantics=("parallel", "arbitrary"),
            vmem_limit_bytes=vmem_limit,
        ),
        cost_estimate=cost,
    )(x2d, w13t, w2t)

    if Mp != M:
        out = out[:M]
    return out.reshape(orig_shape)


def ffn_simple_ref(x, w1, w2, w3):
    # w1, w3: [H, D]; w2: [D, H]  (PyTorch nn.Linear layout)
    h1 = x @ w1.T
    h3 = x @ w3.T
    return (jax.nn.silu(h1) * h3) @ w2.T


if __name__ == "__main__":
    key = jax.random.PRNGKey(0)
    batch, seq, in_features, hidden_dim = 2, 8, 32, 64

    kx, k1, k2, k3 = jax.random.split(key, 4)
    x = jax.random.normal(kx, (batch, seq, in_features), dtype=jnp.float32)
    # PyTorch nn.Linear weight layout: [out, in].
    w1 = jax.random.normal(k1, (hidden_dim, in_features), jnp.float32) * 0.05
    w2 = jax.random.normal(k2, (in_features, hidden_dim), jnp.float32) * 0.05
    w3 = jax.random.normal(k3, (hidden_dim, in_features), jnp.float32) * 0.05

    y_ref = ffn_simple_ref(x, w1, w2, w3)

    # 1) f32 compute path (structural correctness; approx reciprocal -> ~1e-3 tol).
    w13t_f32, w2t_f32 = prepare_ffn_weights(w1, w2, w3, dtype=jnp.float32)
    y_f32 = jax.block_until_ready(ffn_simple_pallas(x, w13t_f32, w2t_f32))
    assert y_f32.shape == y_ref.shape == (batch, seq, in_features)
    assert jnp.allclose(y_f32, y_ref, atol=1e-3, rtol=1e-2), "f32 path mismatch"

    # 2) Production default: bf16 weight/activation streaming, f32 accumulation.
    w13t_bf16, w2t_bf16 = prepare_ffn_weights(w1, w2, w3)   # bf16
    y_bf16 = jax.block_until_ready(ffn_simple_pallas(x, w13t_bf16, w2t_bf16))
    assert y_bf16.shape == y_ref.shape
    assert jnp.allclose(y_bf16, y_ref, atol=3e-2, rtol=3e-2), "bf16 path mismatch"

    # 3) Multi-H-tile path (forces the accumulator kernel: H=256, th=128).
    hidden_big = 256
    kb1, kb2, kb3 = jax.random.split(k1, 3)
    wb1 = jax.random.normal(kb1, (hidden_big, in_features), jnp.float32) * 0.05
    wb2 = jax.random.normal(kb2, (in_features, hidden_big), jnp.float32) * 0.05
    wb3 = jax.random.normal(kb3, (hidden_big, in_features), jnp.float32) * 0.05
    w13t_b, w2t_b = prepare_ffn_weights(wb1, wb2, wb3, dtype=jnp.float32)
    y_multi = jax.block_until_ready(ffn_simple_pallas(x, w13t_b, w2t_b, th=128))
    y_multi_ref = ffn_simple_ref(x, wb1, wb2, wb3)
    assert jnp.allclose(y_multi, y_multi_ref, atol=1e-3, rtol=1e-2), "multi-H mismatch"

    print("KERNEL_OK")
</pallas_src>

<mosaic_0001>
module attributes {stable_mosaic.version = 11 : i64} {
  func.func @_ffn_kernel_single(%arg0: i32, %arg1: i32, %arg2: memref<16x32xf32, #tpu.memory_space<vmem>>, %arg3: memref<2x32x64xf32, #tpu.memory_space<vmem>>, %arg4: memref<64x32xf32, #tpu.memory_space<vmem>>, %arg5: memref<16x32xf32, #tpu.memory_space<vmem>>) attributes {dimension_semantics = [#tpu.dimension_semantics<parallel>, #tpu.dimension_semantics<arbitrary>], iteration_bounds = array<i64: 1, 1>, scalar_prefetch = 0 : i64, scratch_operands = 0 : i64, tpu.core_type = #tpu.core_type<tc>, window_params = [{transform_indices = @transform_0, window_bounds = array<i64: 16, 32>}, {transform_indices = @transform_1, window_bounds = array<i64: 2, 32, 64>}, {transform_indices = @transform_2, window_bounds = array<i64: 64, 32>}, {transform_indices = @transform_3, window_bounds = array<i64: 16, 32>}]} {
    %c0 = arith.constant 0 : index
    %c0_0 = arith.constant 0 : index
    %0 = vector.load %arg2[%c0, %c0_0] : memref<16x32xf32, #tpu.memory_space<vmem>>, vector<16x32xf32>
    %c0_1 = arith.constant 0 : index
    %c0_2 = arith.constant 0 : index
    %c0_3 = arith.constant 0 : index
    %1 = vector.load %arg3[%c0_1, %c0_2, %c0_3] : memref<2x32x64xf32, #tpu.memory_space<vmem>>, vector<1x32x64xf32>
    %2 = vector.shape_cast %1 : vector<1x32x64xf32> to vector<32x64xf32>
    %cst = arith.constant dense<0.000000e+00> : vector<16x64xf32>
    %3 = tpu.matmul %0, %2, %cst {dimension_numbers = #tpu.dot_dimension_numbers<[1], [0], [0], [1], [0, 0, 1, 1], [], []>} : vector<16x32xf32>, vector<32x64xf32>, vector<16x64xf32> -> vector<16x64xf32>
    %c1 = arith.constant 1 : index
    %c0_4 = arith.constant 0 : index
    %c0_5 = arith.constant 0 : index
    %4 = vector.load %arg3[%c1, %c0_4, %c0_5] : memref<2x32x64xf32, #tpu.memory_space<vmem>>, vector<1x32x64xf32>
    %5 = vector.shape_cast %4 : vector<1x32x64xf32> to vector<32x64xf32>
    %cst_6 = arith.constant dense<0.000000e+00> : vector<16x64xf32>
    %6 = tpu.matmul %0, %5, %cst_6 {dimension_numbers = #tpu.dot_dimension_numbers<[1], [0], [0], [1], [0, 0, 1, 1], [], []>} : vector<16x32xf32>, vector<32x64xf32>, vector<16x64xf32> -> vector<16x64xf32>
    %cst_7 = arith.constant 0.000000e+00 : f32
    %7 = vector.broadcast %cst_7 : f32 to vector<16x64xf32>
    %8 = arith.subf %7, %3 : vector<16x64xf32>
    %9 = math.exp %8 : vector<16x64xf32>
    %cst_8 = arith.constant 1.000000e+00 : f32
    %10 = vector.broadcast %cst_8 : f32 to vector<16x64xf32>
    %11 = arith.addf %10, %9 : vector<16x64xf32>
    %12 = tpu.reciprocal %11 {approx = true} : vector<16x64xf32> -> vector<16x64xf32>
    %13 = arith.mulf %3, %12 : vector<16x64xf32>
    %14 = arith.mulf %13, %6 : vector<16x64xf32>
    %c0_9 = arith.constant 0 : index
    %c0_10 = arith.constant 0 : index
    %15 = vector.load %arg4[%c0_9, %c0_10] : memref<64x32xf32, #tpu.memory_space<vmem>>, vector<64x32xf32>
    %cst_11 = arith.constant dense<0.000000e+00> : vector<16x32xf32>
    %16 = tpu.matmul %14, %15, %cst_11 {dimension_numbers = #tpu.dot_dimension_numbers<[1], [0], [0], [1], [0, 0, 1, 1], [], []>} : vector<16x64xf32>, vector<64x32xf32>, vector<16x32xf32> -> vector<16x32xf32>
    %c0_12 = arith.constant 0 : index
    %c0_13 = arith.constant 0 : index
    %17 = vector.load %arg5[%c0_12, %c0_13] : memref<16x32xf32, #tpu.memory_space<vmem>>, vector<16x32xf32>
    tpu.vector_store %arg5[%c0_12, %c0_13], %16 {strides = array<i32>} : memref<16x32xf32, #tpu.memory_space<vmem>>, vector<16x32xf32>,
    return
  }
  func.func @transform_0(%arg0: i32, %arg1: i32) -> (i32, i32) {
    %c0_i32 = arith.constant 0 : i32
    %c0_i32_0 = arith.constant 0 : i32
    return %arg0, %c0_i32 : i32, i32
  }
  func.func @transform_1(%arg0: i32, %arg1: i32) -> (i32, i32, i32) {
    %c0_i32 = arith.constant 0 : i32
    %c0_i32_0 = arith.constant 0 : i32
    %c0_i32_1 = arith.constant 0 : i32
    return %c0_i32, %c0_i32_0, %arg1 : i32, i32, i32
  }
  func.func @transform_2(%arg0: i32, %arg1: i32) -> (i32, i32) {
    %c0_i32 = arith.constant 0 : i32
    %c0_i32_0 = arith.constant 0 : i32
    return %arg1, %c0_i32 : i32, i32
  }
  func.func @transform_3(%arg0: i32, %arg1: i32) -> (i32, i32) {
    %c0_i32 = arith.constant 0 : i32
    %c0_i32_0 = arith.constant 0 : i32
    return %arg0, %c0_i32 : i32, i32
  }
}

</mosaic_0001>

<bundles_post_ra>
// kernel: tpu_custom_call.1
= control target key start
LH: loop header
LB: loop body
LE: loop exit
PB: predicated region body
PF: predicated region fallthrough
CT: control target
= control target key end

     0   :  { %vm21_vm0 = vcmask 261120   ;;  %s540_s0 = inlined_call_operand.vmem [shape: f32[16,32], index: 0, kind: input, shape index: {}]   ;;  %s541_s1 = inlined_call_operand.vmem [shape: f32[2,32,64], index: 1, kind: input, shape index: {}]   ;;  %s542_s2 = inlined_call_operand.vmem [shape: f32[64,32], index: 2, kind: input, shape index: {}]   ;;  %s543_s3 = inlined_call_operand.hbm [shape: f32[16,32], index: 3, kind: output, shape index: {}]  }
   0x1   :  { %v17_v0 = vld [vmem:[%s541_s1] sm:$0xff]  ;;  %v18_v1 = vld [vmem:[%s541_s1 + $0x8] sm:$0xff]  ;;  %v19_v2 = vld [vmem:[%s541_s1 + $0x10] sm:$0xff] }
   0x2   :  { %v378_v3 = vpack.c.bf16 %v18_v1, %v17_v0  ;;  %v20_v4 = vld [vmem:[%s541_s1 + $0x18] sm:$0xff]  ;;  %v15_v5 = vld [vmem:[%s540_s0] sm:$0xff]  ;;  %v308_v8 = vld [vmem:[%s541_s1 + $0x28] sm:$0xff] }
   0x3   :  { %v382_v6 = vpack.c.bf16 %v20_v4, %v19_v2  ;;  %345 = vmatprep.mubr.msk.f32.mxu1 %vm21_vm0, %v15_v5  ;;  %v307_v7 = vld [vmem:[%s541_s1 + $0x20] sm:$0xff] }
   0x4   :  { %379 = vmatprep.subr.bf16.mxu1 %v378_v3 }
   0x5   :  { %8 = vsyncpa [#allocation3], 0  ;;  %381 = vmatpush3.bf16.msra.mxu1 %v378_v3  ;;  %v386_v9 = vpack.c.bf16 %v308_v8, %v307_v7  ;;  %v309_v10 = vld [vmem:[%s541_s1 + $0x30] sm:$0xff]  ;;  %v310_v11 = vld [vmem:[%s541_s1 + $0x38] sm:$0xff]  ;;  %vm205_vm1 = vcmask 523264  }
   0x6   :  { %383 = vmatprep.subr.bf16.mxu1 %v382_v6  ;;  %v16_v12 = vld [vmem:[%s540_s0 + $0x8] sm:$0xff]  ;;  %v390_v13 = vpack.c.bf16 %v310_v11, %v309_v10  ;;  %v197_v14 = vld [vmem:[%s542_s2] sm:$0xff]  ;;  %v199_v17 = vld [vmem:[%s542_s2 + $0x10] sm:$0xff] }
   0x7   :  { %v198_v15 = vld [vmem:[%s542_s2 + $0x8] sm:$0xff]  ;;  %v200_v18 = vld [vmem:[%s542_s2 + $0x18] sm:$0xff]  ;;  %v201_v20 = vld [vmem:[%s542_s2 + $0x20] sm:$0xff] }
   0x8   :  { %v394_v16 = vpack.c.bf16 %v198_v15, %v197_v14  ;;  %v398_v19 = vpack.c.bf16 %v200_v18, %v199_v17  ;;  %v202_v21 = vld [vmem:[%s542_s2 + $0x28] sm:$0xff]  ;;  %v203_v23 = vld [vmem:[%s542_s2 + $0x30] sm:$0xff]  ;;  %v204_v24 = vld [vmem:[%s542_s2 + $0x38] sm:$0xff]  ;;  %s445_s2 = smov [#allocation2]  }
   0x9   :  { %385 = vmatpush3.bf16.msra.mxu1 %v382_v6  ;;  %v402_v22 = vpack.c.bf16 %v202_v21, %v201_v20  ;;  %v406_v25 = vpack.c.bf16 %v204_v24, %v203_v23  ;;  %s294_s19 = sshll.u32 %s445_s2, 4  ;;  %s295_s19 = int_to_ptr.vmem [resolvable:$true] %s294_s19 }
   0xa   :  { %387 = vmatprep.subr.bf16.mxu1 %v386_v9  ;;  %395 = vmatprep.subr.bf16.mxu0 %v394_v16  ;;  %s421_s20 = scalar_lea.vmem %s295_s19, 256  ;;  %p426_p1 = scmp.lt.s32.totalorder %s295_s19, %s295_s19 }
   0xb   :  { %397 = vmatpush3.bf16.msra.mxu0 %v394_v16  ;;  %p422_p0 = scmp.ne.s32.totalorder %s295_s19, %s421_s20  ;;  %p427_p2 = scmp.lt.s32.totalorder %s421_s20, %s421_s20 }
   0xc   :  { %346 = vmatmul.mubr.msk.f32.vlgmr.msra.gmra.mrb[0].mxu1 %vm21_vm0, %v16_v12  ;;  %399 = vmatprep.subr.bf16.mxu0 %v398_v19 }
   0xd   :  { %389 = vmatpush3.bf16.msra.mxu1 %v386_v9  ;;  %356 = vmatprep.mubr.msk.f32.mxu1 %vm21_vm0, %v15_v5  ;;  %p428_p3 = por %p427_p2, %p426_p1 }
   0xe   :  { %391 = vmatprep.subr.bf16.mxu1 %v390_v13 }
   0xf   :  { %401 = vmatpush3.bf16.msra.mxu0 %v398_v19  ;;  %p429_p4 = pnand %p428_p3, %p422_p0 }
  0x10   :  { %403 = vmatprep.subr.bf16.mxu0 %v402_v22 }
  0x11   :  { %393 = vmatpush3.bf16.msra.mxu1 %v390_v13 }
  0x13   :  { %405 = vmatpush3.bf16.msra.mxu0 %v402_v22 }
  0x14   :  { %357 = vmatmul.mubr.msk.f32.vlgmr.msra.gmra.mrb[2].mxu1 %vm21_vm0, %v16_v12  ;;  %407 = vmatprep.subr.bf16.mxu0 %v406_v25 }
  0x17   :  { %409 = vmatpush3.bf16.msra.mxu0 %v406_v25 }
  0xdf   :  { %v347_v26 = vpop.f32.mrb[0].mxu1 }
  0xe0   :  { %v184_v27 = vsub.f32 0.0, %v347_v26  ;;  %v94_v28 = vpop.f32.mrb[1].mxu1 }
  0xe1   :  { %v183_v29 = vsub.f32 0.0, %v94_v28 }
  0xe2   :  { %v187_v30 = vmul.f32 1.442695, %v184_v27 }
  0xe3   :  { %v185_v31 = vmul.f32 1.442695, %v183_v29 }
  0xe4   :  { %413 = vpow2.f32 %v187_v30 }
  0xe5   :  { %415 = vpow2.f32 %v185_v31 }
  0xe7   :  { %v358_v32 = vpop.f32.mrb[2].mxu1 }
  0xe8   :  { %v174_v33 = vpop.f32.mrb[3].mxu1 }
  0xee   :  { %v414_v34 = vpop.eup %413 }
  0xef   :  { %v416_v35 = vpop.eup %415  ;;  %v190_v36 = vadd.f32 1.0, %v414_v34 }
  0xf0   :  { %v189_v37 = vadd.f32 1.0, %v416_v35 }
  0xf1   :  { %417 = vrcp.f32 %v190_v36 }
  0xf2   :  { %419 = vrcp.f32 %v189_v37 }
  0xfb   :  { %v418_v38 = vpop.eup %417 }
  0xfc   :  { %v420_v39 = vpop.eup %419  ;;  %v194_v40 = vmul.f32 %v418_v38, %v347_v26 }
  0xfd   :  { %v193_v41 = vmul.f32 %v420_v39, %v94_v28 }
  0xfe   :  { %v196_v42 = vmul.f32 %v358_v32, %v194_v40 }
  0xff   :  { %v195_v43 = vmul.f32 %v193_v41, %v174_v33 }
 0x101   :  { %375 = vmatprep.mubr.msk.f32.mxu0 %vm205_vm1, %v195_v43 }
 0x102   :  { %376 = vmatmul.mubr.msk.f32.vlgmr.msra.gmra.mrb[0].mxu0 %vm205_vm1, %v196_v42 }
 0x1d5   :  { %v377_v44 = vpop.f32.mrb[0].mxu0 }
 0x1d6   :  { %288 = vst.msk [vmem:[#allocation2 + $0x8] sm:$0xff] %vm21_vm0, %v377_v44  ;;  %v278_v45 = vpop.f32.mrb[1].mxu0 }
 0x1d7   :  { %287 = vst.msk [vmem:[#allocation2] sm:$0xff] %vm21_vm0, %v278_v45 }
 0x1d8   :  { %432 = shalt.err (!%p429_p4)
}
 0x1d9   :  { %s433_s23 = scalar_lea.hbm %s543_s3, 256 }
 0x1da   :  { %p434_p5 = scmp.ne.s32.totalorder %s543_s3, %s433_s23  ;;  %p437_p6 = scmp.lt.u32.totalorder %s433_s23, %s543_s3 }
 0x1dc   :  { %p439_p7 = pnand %p437_p6, %p434_p5 }
 0x1de   :  { %442 = shalt.err (!%p439_p7)
}
 0x1df   :  { %s446_s28 = smov 128   ;;  %s447_s29 = smov 8  }
 0x1e0   :  { %300 = dma.vmem_to_hbm [thread:$0]  %s295_s19, 256, %s543_s3, [#allocation3], %s446_s28, %s446_s28, %s447_s29  }
 0x1e1   :  { %443 = dma.done.wait [#allocation3], 256  }
 0x1e2   :  { %444 = vsyncadd [#allocation3], 4294967040 }
 0x1e3   :  { %304 = vsyncpa [#allocation3], 1 }

</bundles_post_ra>
